<compile_context>
chip_gen: v6e
topology: v6e:2x2x1
jax: 0.10.0
libtpu: 0.0.40
codegen_flags: <defaults>
</compile_context>

<pallas_src>
import jax
import jax.numpy as jnp
from jax.experimental import pallas as pl


def _round_up(x, m):
    return ((x + m - 1) // m) * m


def make_shelgon_forward(params, batch_size):
    """Builds a jitted Shelgon forward fn. All parameter plumbing happens once, here."""
    f32 = jnp.float32
    B = batch_size
    P, E = params["w1"].shape          # proj_in Linear(E -> P) weight is (P, E)
    L, S = params["wc1"].shape         # proj_in Conv1d(S -> L, k=1) weight is (L, S)
    V = params["wv"].shape[1]          # decoder LM head weight is (E, V)

    LANE, SUB = 128, 8
    Fp = LANE * max(pl.cdiv(P, LANE), pl.cdiv(V, LANE))   # common padded lane width
    Epad = _round_up(E, SUB)
    Lpad = _round_up(L, SUB)
    Spad = _round_up(S, SUB)
    BS = B * S

    # ------------- parameter-only plumbing: runs ONCE (not per forward call) -------------
    w1 = params["w1"].astype(f32);  b1 = params["b1"].astype(f32)
    wc1 = params["wc1"].astype(f32); bc1 = params["bc1"].astype(f32)
    wc2 = params["wc2"].astype(f32); bc2 = params["bc2"].astype(f32)
    w2 = params["w2"].astype(f32);  b2 = params["b2"].astype(f32)
    wv = params["wv"].astype(f32);  bv = params["bv"].astype(f32)

    # proj_in Linear pre-transposed and lane-padded: (E, Fp).
    w1t = jnp.zeros((E, Fp), f32).at[:, :P].set(w1.T)
    # effective proj_in bias: Wc1 @ (1_S b1) + bc1, shape (L, P).
    # NOTE: its padded lanes MUST stay exactly zero so the -1e30 gumbel padding keeps the
    # padded softmax lanes at exactly 0 probability.
    b_in = wc1.sum(axis=1, keepdims=True) * b1 + bc1
    # fused tail: rec = demb@Wv + U@(W2^T@Wv) + (b_out@Wv + bv)
    w_fused = w2.T @ wv                                     # (P, V)
    b_out = bc2 * w2.sum(axis=1)[None, :] + b2              # (S, E)
    b_fused = b_out @ wv + bv                               # (S, V)

    # One lane-padded constant slab; every block starts at a sublane-aligned (x8) row.
    o_w1t = 0
    o_bin = o_w1t + Epad
    o_wf = o_bin + Lpad
    o_wv = o_wf + Fp
    o_bf = o_wv + Epad
    n_rows = o_bf + Spad
    wide = jnp.zeros((n_rows, Fp), f32)
    wide = wide.at[o_w1t:o_w1t + E, :].set(w1t)
    wide = wide.at[o_bin:o_bin + L, :P].set(b_in)
    wide = wide.at[o_wf:o_wf + P, :V].set(w_fused)
    wide = wide.at[o_wv:o_wv + E, :V].set(wv)
    wide = wide.at[o_bf:o_bf + S, :V].set(b_fused)

    # Tiny slab holding both conv (sequence-mix) weights.
    conv_w = max(S, L)
    conv = jnp.zeros((Lpad + Spad, conv_w), f32)
    conv = conv.at[0:L, 0:S].set(wc1)
    conv = conv.at[Lpad:Lpad + S, 0:L].set(wc2)

    def kernel(act_ref, g_ref, conv_ref, wide_ref, rec_ref, logits_ref, classes_ref):
        # static, sublane-aligned views into the concatenated operand slabs
        x2 = act_ref[0:BS, :]                               # (B*S, E) encoder hidden states
        d2 = act_ref[BS:2 * BS, :]                          # (B*S, E) decoder token embeddings
        wc1_k = conv_ref[0:L, 0:S]                          # (L, S)
        wc2_k = conv_ref[Lpad:Lpad + S, 0:L]                # (S, L)
        w1t_k = wide_ref[o_w1t:o_w1t + E, :]                # (E, Fp)
        b_in_k = wide_ref[o_bin:o_bin + L, :]               # (L, Fp)
        w_fused_k = wide_ref[o_wf:o_wf + Fp, :]             # (Fp, Fp)
        wv_k = wide_ref[o_wv:o_wv + E, :]                   # (E, Fp)
        b_fused_k = wide_ref[o_bf:o_bf + S, :]              # (S, Fp)

        # proj_in: Linear(E->P) then per-batch sequence mix Conv1d(S->L, k=1).
        y = jnp.dot(x2, w1t_k, preferred_element_type=jnp.float32)        # (B*S, Fp)
        y3 = y.reshape(B, S, Fp)                                          # free: S % 8 == 0
        logits = jnp.einsum("bls,bsp->blp",
                            jnp.broadcast_to(wc1_k, (B, L, S)), y3,
                            preferred_element_type=jnp.float32) + b_in_k[None]
        logits_ref[...] = logits

        # gumbel_softmax(logits, dim=-1), soft, tau=1 (noise from host; padded lanes carry
        # -1e30 noise and zero logits, so their probability is exactly 0). Exact divide.
        z = logits + g_ref[...]
        z = z - jnp.max(z, axis=-1, keepdims=True)
        ez = jnp.exp(z)
        classes = ez / jnp.sum(ez, axis=-1, keepdims=True)
        classes_ref[...] = classes

        # proj_out sequence mix Conv1d(L->S, k=1); its Linear(P->E) is fused into w_fused.
        u3 = jnp.einsum("bsl,blp->bsp",
                        jnp.broadcast_to(wc2_k, (B, S, L)), classes,
                        preferred_element_type=jnp.float32)               # (B, S, Fp)
        u2 = u3.reshape(BS, Fp)

        # TODO(synk): full pretrained decoder (self/cross-attention stack) not translated; a
        # single LM head over (decoder embeddings + cross conditioning) stands in.
        rec = (jnp.dot(d2, wv_k, preferred_element_type=jnp.float32)
               + jnp.dot(u2, w_fused_k, preferred_element_type=jnp.float32))
        rec_ref[...] = rec.reshape(B, S, Fp) + b_fused_k[None]

    pallas_fn = pl.pallas_call(
        kernel,
        out_shape=(
            jax.ShapeDtypeStruct((B, S, Fp), f32),   # reconstructed logits (lane padded)
            jax.ShapeDtypeStruct((B, L, Fp), f32),   # latent logits (lane padded)
            jax.ShapeDtypeStruct((B, L, Fp), f32),   # latent classes (lane padded)
        ),
    )

    @jax.jit
    def forward(encoder_output, gumbel_noise, dec_emb):
        x2 = encoder_output.reshape(BS, E).astype(f32)
        d2 = dec_emb.reshape(BS, E).astype(f32)
        act = jnp.concatenate([x2, d2], axis=0)                          # (2*B*S, E)
        g = jnp.full((B, L, Fp), -1e30, f32).at[:, :, :P].set(gumbel_noise.astype(f32))
        rec, logits, classes = pallas_fn(act, g, conv, wide)
        return rec[..., :V], logits[..., :P], classes[..., :P]

    return forward


def reference(encoder_output, gumbel_noise, dec_emb, p):
    y = jnp.einsum("bse,pe->bsp", encoder_output, p["w1"]) + p["b1"]
    logits = jnp.einsum("ls,bsp->blp", p["wc1"], y) + p["bc1"]
    classes = jax.nn.softmax(logits + gumbel_noise, axis=-1)
    c1 = jnp.einsum("sl,blp->bsp", p["wc2"], classes) + p["bc2"]
    cond = jnp.einsum("bsp,ep->bse", c1, p["w2"]) + p["b2"]
    rec = jnp.einsum("bse,ev->bsv", dec_emb + cond, p["wv"]) + p["bv"]
    return rec, logits, classes


if __name__ == "__main__":
    # small shapes consistent with the module
    B, S, E, L, P, V = 2, 8, 32, 4, 16, 64   # batch, seq_len, emb_size,
                                             # num_latent_classes, num_labels_per_class, vocab
    VOCAB_IN = 100

    key = jax.random.PRNGKey(0)
    ks = jax.random.split(key, 16)

    encoder_input_ids = jax.random.randint(ks[0], (B, S), 0, VOCAB_IN)
    encoder_attention_mask = jnp.ones((B, S), jnp.float32)
    decoder_input_ids = jax.random.randint(ks[1], (B, S), 0, VOCAB_IN)
    decoder_attention_mask = jnp.ones((B, S), jnp.float32)

    # TODO(synk): pretrained HF encoder not translated; embedding-lookup stand-in.
    enc_emb_table = 0.02 * jax.random.normal(ks[2], (VOCAB_IN, E), jnp.float32)
    dec_emb_table = 0.02 * jax.random.normal(ks[3], (VOCAB_IN, E), jnp.float32)
    encoder_output = enc_emb_table[encoder_input_ids] * encoder_attention_mask[..., None]
    dec_emb = dec_emb_table[decoder_input_ids] * decoder_attention_mask[..., None]

    # gumbel noise for gumbel_softmax (tau=1, soft)
    gumbel_noise = jax.random.gumbel(ks[4], (B, L, P), jnp.float32)

    # deterministic parameter init (shapes from the module's __init__)
    params = {
        "w1":  0.1 * jax.random.normal(ks[5],  (P, E), jnp.float32),   # Linear(E -> P)
        "b1":  0.1 * jax.random.normal(ks[6],  (1, P), jnp.float32),
        "wc1": 0.1 * jax.random.normal(ks[7],  (L, S), jnp.float32),   # Conv1d(S -> L, k=1)
        "bc1": 0.1 * jax.random.normal(ks[8],  (L, 1), jnp.float32),
        "wc2": 0.1 * jax.random.normal(ks[9],  (S, L), jnp.float32),   # Conv1d(L -> S, k=1)
        "bc2": 0.1 * jax.random.normal(ks[10], (S, 1), jnp.float32),
        "w2":  0.1 * jax.random.normal(ks[11], (E, P), jnp.float32),   # Linear(P -> E)
        "b2":  0.1 * jax.random.normal(ks[12], (1, E), jnp.float32),
        "wv":  0.1 * jax.random.normal(ks[13], (E, V), jnp.float32),   # decoder LM head
        "bv":  0.1 * jax.random.normal(ks[14], (1, V), jnp.float32),
    }

    # build once (all parameter plumbing happens here), call the jitted forward.
    shelgon_fwd = make_shelgon_forward(params, batch_size=B)
    rec, latent_logits, latent_classes = shelgon_fwd(encoder_output, gumbel_noise, dec_emb)
    jax.block_until_ready((rec, latent_logits, latent_classes))

    rec_r, logits_r, classes_r = reference(encoder_output, gumbel_noise, dec_emb, params)
    assert jnp.allclose(rec, rec_r, atol=1e-3, rtol=1e-3)
    assert jnp.allclose(latent_logits, logits_r, atol=1e-3, rtol=1e-3)
    assert jnp.allclose(latent_classes, classes_r, atol=1e-3, rtol=1e-3)

    print("KERNEL_OK")
</pallas_src>

<mosaic_0001>
module attributes {stable_mosaic.version = 11 : i64} {
  func.func @kernel(%arg0: memref<32x32xf32, #tpu.memory_space<vmem>>, %arg1: memref<2x4x128xf32, #tpu.memory_space<vmem>>, %arg2: memref<16x8xf32, #tpu.memory_space<vmem>>, %arg3: memref<208x128xf32, #tpu.memory_space<vmem>>, %arg4: memref<2x8x128xf32, #tpu.memory_space<vmem>>, %arg5: memref<2x4x128xf32, #tpu.memory_space<vmem>>, %arg6: memref<2x4x128xf32, #tpu.memory_space<vmem>>) attributes {dimension_semantics = [], scalar_prefetch = 0 : i64, scratch_operands = 0 : i64, tpu.core_type = #tpu.core_type<tc>} {
    %c0 = arith.constant 0 : index
    %c0_0 = arith.constant 0 : index
    %0 = vector.load %arg0[%c0, %c0_0] : memref<32x32xf32, #tpu.memory_space<vmem>>, vector<16x32xf32>
    %c16 = arith.constant 16 : index
    %c0_1 = arith.constant 0 : index
    %1 = vector.load %arg0[%c16, %c0_1] : memref<32x32xf32, #tpu.memory_space<vmem>>, vector<16x32xf32>
    %c0_2 = arith.constant 0 : index
    %c0_3 = arith.constant 0 : index
    %2 = vector.load %arg2[%c0_2, %c0_3] : memref<16x8xf32, #tpu.memory_space<vmem>>, vector<4x8xf32>
    %c8 = arith.constant 8 : index
    %c0_4 = arith.constant 0 : index
    %3 = vector.load %arg2[%c8, %c0_4] : memref<16x8xf32, #tpu.memory_space<vmem>>, vector<8x4xf32>
    %c0_5 = arith.constant 0 : index
    %c0_6 = arith.constant 0 : index
    %4 = vector.load %arg3[%c0_5, %c0_6] : memref<208x128xf32, #tpu.memory_space<vmem>>, vector<32x128xf32>
    %c32 = arith.constant 32 : index
    %c0_7 = arith.constant 0 : index
    %5 = vector.load %arg3[%c32, %c0_7] : memref<208x128xf32, #tpu.memory_space<vmem>>, vector<4x128xf32>
    %c40 = arith.constant 40 : index
    %c0_8 = arith.constant 0 : index
    %6 = vector.load %arg3[%c40, %c0_8] : memref<208x128xf32, #tpu.memory_space<vmem>>, vector<128x128xf32>
    %c168 = arith.constant 168 : index
    %c0_9 = arith.constant 0 : index
    %7 = vector.load %arg3[%c168, %c0_9] : memref<208x128xf32, #tpu.memory_space<vmem>>, vector<32x128xf32>
    %c200 = arith.constant 200 : index
    %c0_10 = arith.constant 0 : index
    %8 = vector.load %arg3[%c200, %c0_10] : memref<208x128xf32, #tpu.memory_space<vmem>>, vector<8x128xf32>
    %cst = arith.constant dense<0.000000e+00> : vector<16x128xf32>
    %9 = tpu.matmul %0, %4, %cst {dimension_numbers = #tpu.dot_dimension_numbers<[1], [0], [0], [1], [0, 0, 1, 1], [], []>} : vector<16x32xf32>, vector<32x128xf32>, vector<16x128xf32> -> vector<16x128xf32>
    %10 = vector.shape_cast %9 : vector<16x128xf32> to vector<2x8x128xf32>
    %11 = vector.shape_cast %2 : vector<4x8xf32> to vector<1x4x8xf32>
    %12 = vector.broadcast %11 : vector<1x4x8xf32> to vector<2x4x8xf32>
    "tpu.trace_start"() <{level = 10 : i32, message = "bls,bsp->blp"}> : () -> ()
    %cst_11 = arith.constant dense<0.000000e+00> : vector<2x4x128xf32>
    %13 = tpu.matmul %12, %10, %cst_11 {dimension_numbers = #tpu.dot_dimension_numbers<[2], [1], [1], [2], [0, 0, 0, 1, 1, 2], [0], [0]>} : vector<2x4x8xf32>, vector<2x8x128xf32>, vector<2x4x128xf32> -> vector<2x4x128xf32>
    "tpu.trace_stop"() : () -> ()
    %14 = vector.shape_cast %5 : vector<4x128xf32> to vector<1x4x128xf32>
    %15 = vector.broadcast %14 : vector<1x4x128xf32> to vector<2x4x128xf32>
    %16 = arith.addf %13, %15 : vector<2x4x128xf32>
    %c0_12 = arith.constant 0 : index
    %c0_13 = arith.constant 0 : index
    %c0_14 = arith.constant 0 : index
    %17 = vector.load %arg5[%c0_12, %c0_13, %c0_14] : memref<2x4x128xf32, #tpu.memory_space<vmem>>, vector<2x4x128xf32>
    tpu.vector_store %arg5[%c0_12, %c0_13, %c0_14], %16 {strides = array<i32>} : memref<2x4x128xf32, #tpu.memory_space<vmem>>, vector<2x4x128xf32>,
    %c0_15 = arith.constant 0 : index
    %c0_16 = arith.constant 0 : index
    %c0_17 = arith.constant 0 : index
    %18 = vector.load %arg1[%c0_15, %c0_16, %c0_17] : memref<2x4x128xf32, #tpu.memory_space<vmem>>, vector<2x4x128xf32>
    %19 = arith.addf %16, %18 : vector<2x4x128xf32>
    %cst_18 = arith.constant dense<0xFF800000> : vector<2x4xf32>
    %20 = vector.multi_reduction <maximumf>, %19, %cst_18 [2] : vector<2x4x128xf32> to vector<2x4xf32>
    %21 = vector.shape_cast %20 : vector<2x4xf32> to vector<2x4x1xf32>
    %22 = vector.broadcast %21 : vector<2x4x1xf32> to vector<2x4x128xf32>
    %23 = arith.subf %19, %22 : vector<2x4x128xf32>
    %24 = math.exp %23 : vector<2x4x128xf32>
    %cst_19 = arith.constant dense<0.000000e+00> : vector<2x4xf32>
    %25 = vector.multi_reduction <add>, %24, %cst_19 [2] : vector<2x4x128xf32> to vector<2x4xf32>
    %26 = vector.shape_cast %25 : vector<2x4xf32> to vector<2x4x1xf32>
    %27 = vector.broadcast %26 : vector<2x4x1xf32> to vector<2x4x128xf32>
    %28 = arith.divf %24, %27 : vector<2x4x128xf32>
    %c0_20 = arith.constant 0 : index
    %c0_21 = arith.constant 0 : index
    %c0_22 = arith.constant 0 : index
    %29 = vector.load %arg6[%c0_20, %c0_21, %c0_22] : memref<2x4x128xf32, #tpu.memory_space<vmem>>, vector<2x4x128xf32>
    tpu.vector_store %arg6[%c0_20, %c0_21, %c0_22], %28 {strides = array<i32>} : memref<2x4x128xf32, #tpu.memory_space<vmem>>, vector<2x4x128xf32>,
    %30 = vector.shape_cast %3 : vector<8x4xf32> to vector<1x8x4xf32>
    %31 = vector.broadcast %30 : vector<1x8x4xf32> to vector<2x8x4xf32>
    "tpu.trace_start"() <{level = 10 : i32, message = "bsl,blp->bsp"}> : () -> ()
    %cst_23 = arith.constant dense<0.000000e+00> : vector<2x8x128xf32>
    %32 = tpu.matmul %31, %28, %cst_23 {dimension_numbers = #tpu.dot_dimension_numbers<[2], [1], [1], [2], [0, 0, 0, 1, 1, 2], [0], [0]>} : vector<2x8x4xf32>, vector<2x4x128xf32>, vector<2x8x128xf32> -> vector<2x8x128xf32>
    "tpu.trace_stop"() : () -> ()
    %33 = vector.shape_cast %32 : vector<2x8x128xf32> to vector<16x128xf32>
    %cst_24 = arith.constant dense<0.000000e+00> : vector<16x128xf32>
    %34 = tpu.matmul %1, %7, %cst_24 {dimension_numbers = #tpu.dot_dimension_numbers<[1], [0], [0], [1], [0, 0, 1, 1], [], []>} : vector<16x32xf32>, vector<32x128xf32>, vector<16x128xf32> -> vector<16x128xf32>
    %cst_25 = arith.constant dense<0.000000e+00> : vector<16x128xf32>
    %35 = tpu.matmul %33, %6, %cst_25 {dimension_numbers = #tpu.dot_dimension_numbers<[1], [0], [0], [1], [0, 0, 1, 1], [], []>} : vector<16x128xf32>, vector<128x128xf32>, vector<16x128xf32> -> vector<16x128xf32>
    %36 = arith.addf %34, %35 : vector<16x128xf32>
    %37 = vector.shape_cast %36 : vector<16x128xf32> to vector<2x8x128xf32>
    %38 = vector.shape_cast %8 : vector<8x128xf32> to vector<1x8x128xf32>
    %39 = vector.broadcast %38 : vector<1x8x128xf32> to vector<2x8x128xf32>
    %40 = arith.addf %37, %39 : vector<2x8x128xf32>
    %c0_26 = arith.constant 0 : index
    %c0_27 = arith.constant 0 : index
    %c0_28 = arith.constant 0 : index
    %41 = vector.load %arg4[%c0_26, %c0_27, %c0_28] : memref<2x8x128xf32, #tpu.memory_space<vmem>>, vector<2x8x128xf32>
    tpu.vector_store %arg4[%c0_26, %c0_27, %c0_28], %40 {strides = array<i32>} : memref<2x8x128xf32, #tpu.memory_space<vmem>>, vector<2x8x128xf32>,
    return
  }
}

</mosaic_0001>

<bundles_post_ra>
// kernel: forward.1
= control target key start
LH: loop header
LB: loop body
LE: loop exit
PB: predicated region body
PF: predicated region fallthrough
CT: control target
= control target key end

     0   :  { %12 = vsyncpa [#allocation3], 0  ;;  %s1021_s0 = inlined_call_operand.vmem [shape: f32[32,32], index: 0, kind: input, shape index: {}]   ;;  %s1022_s1 = inlined_call_operand.vmem [shape: f32[2,4,128], index: 1, kind: input, shape index: {}]   ;;  %s1023_s2 = inlined_call_operand.vmem [shape: f32[16,8], index: 2, kind: input, shape index: {}]   ;;  %s1024_s3 = inlined_call_operand.hbm [shape: f32[208,128], index: 3, kind: input, shape index: {}]   ;;  %s1025_s4 = inlined_call_operand.hbm [shape: f32[2,8,128], index: 4, kind: output, shape index: {0}]   ;;  %s1026_s5 = inlined_call_operand.hbm [shape: f32[2,4,128], index: 5, kind: output, shape index: {1}]   ;;  %s1027_s6 = inlined_call_operand.hbm [shape: f32[2,4,128], index: 6, kind: output, shape index: {2}]  }
   0x1   :  { %13 = vsyncpa [#allocation4], 0 }
   0x2   :  { %14 = vsyncpa [#allocation7], 0  ;;  %s912_s21 = smov [#allocation2]  }
   0x3   :  { %s26_s22 = sshll.u32 %s912_s21, 4  ;;  %s27_s22 = int_to_ptr.vmem [resolvable:$true] %s26_s22 }
   0x4   :  { %s834_s23 = scalar_lea.vmem %s27_s22, 3328  ;;  %p839_p1 = scmp.lt.s32.totalorder %s27_s22, %s27_s22 }
   0x5   :  { %p835_p0 = scmp.ne.s32.totalorder %s27_s22, %s834_s23  ;;  %p840_p2 = scmp.lt.s32.totalorder %s834_s23, %s834_s23 }
   0x7   :  { %p841_p3 = por %p840_p2, %p839_p1 }
   0x9   :  { %p842_p4 = pnand %p841_p3, %p835_p0 }
   0xb   :  { %845 = shalt.err (!%p842_p4)
}
   0xc   :  { %s913_s24 = smov 128   ;;  %s914_s25 = smov 8  }
   0xd   :  { %32 = dma.hbm_to_vmem [thread:$0]  %s1024_s3, 3328, %s27_s22, [#allocation3], %s913_s24, %s913_s24, %s914_s25  }
   0xe   :  { %906 = dma.done.wait [#allocation3], 3328  }
   0xf   :  { %907 = vsyncadd [#allocation3], 4294963968  ;;  %vm68_vm0 = vcmask 261120   ;;  %v45_v0 = vld [vmem:[#allocation2 + $0x18] sm:$0xff]  ;;  %v44_v1 = vld [vmem:[#allocation2 + $0x10] sm:$0xff]  ;;  %v915_v6 = vmov 0.0  }
  0x10   :  { %731 = vmatprep.subr.mxu0 %v45_v0  ;;  %v36_v2 = vld [vmem:[%s1021_s0] sm:$0xff]  ;;  %v43_v3 = vld [vmem:[#allocation2 + $0x8] sm:$0xff]  ;;  %vm916_vm1 = vmmov 0   ;;  %vm150_vm2 = vcmask 64512   ;;  %vm300_vm3 = vcmask 1043456   ;;  %v61_v34 = vld [vmem:[#allocation2 + $0x98] sm:$0xff] }
  0x11   :  { %732 = vmatpush3.msra.mxu0 %v45_v0  ;;  %739 = vmatprep.mubr.msk.f32.mxu0 %vm68_vm0, %v36_v2  ;;  %v42_v4 = vld [vmem:[#allocation2] sm:$0xff]  ;;  %v37_v5 = vld [vmem:[%s1021_s0 + $0x8] sm:$0xff]  ;;  %v60_v35 = vld [vmem:[#allocation2 + $0x90] sm:$0xff]  ;;  %vm325_vm4 = vcmask 31744   ;;  %s917_s17 = smov [#allocation6]  }
  0x12   :  { %733 = vmatprep.subr.mxu0 %v44_v1  ;;  %v40_v8 = vld [vmem:[%s1023_s2] sm:$0xf]  ;;  %v297_v17 = vld [vmem:[%s1022_s1 + $0x4] sm:$0xf]  ;;  %v59_v36 = vld [vmem:[#allocation2 + $0x88] sm:$0xff]  ;;  %s652_s18 = sshll.u32 %s917_s17, 4  ;;  %s653_s18 = int_to_ptr.vmem [resolvable:$true] %s652_s18 }
  0x13   :  { %734 = vmatpush3.msra.mxu0 %v44_v1  ;;  %v46_v10 = vld [vmem:[#allocation2 + $0x20] sm:$0xf]  ;;  %v57_v38 = vld [vmem:[#allocation2 + $0x78] sm:$0xff]  ;;  %v56_v39 = vld [vmem:[#allocation2 + $0x70] sm:$0xff]  ;;  %s846_s19 = scalar_lea.vmem %s653_s18, 128  ;;  %p851_p6 = scmp.lt.s32.totalorder %s653_s18, %s653_s18 }
  0x14   :  { %735 = vmatprep.subr.mxu0 %v43_v3  ;;  %v296_v12 = vld [vmem:[%s1022_s1] sm:$0xf]  ;;  %v55_v40 = vld [vmem:[#allocation2 + $0x68] sm:$0xff]  ;;  %v53_v42 = vld [vmem:[#allocation2 + $0x58] sm:$0xff]  ;;  %p847_p5 = scmp.ne.s32.totalorder %s653_s18, %s846_s19  ;;  %p852_p7 = scmp.lt.s32.totalorder %s846_s19, %s846_s19 }
  0x15   :  { %736 = vmatpush3.msra.mxu0 %v43_v3  ;;  %v62_v33 = vld [vmem:[#allocation2 + $0xa0] sm:$0xff]  ;;  %v52_v43 = vld [vmem:[#allocation2 + $0x50] sm:$0xff]  ;;  %v51_v44 = vld [vmem:[#allocation2 + $0x48] sm:$0xff] }
  0x16   :  { %737 = vmatprep.subr.mxu0 %v42_v4  ;;  %762 = vmatprep.subr.mxu1 %v62_v33  ;;  %v58_v37 = vld [vmem:[#allocation2 + $0x80] sm:$0xff]  ;;  %v49_v46 = vld [vmem:[#allocation2 + $0x38] sm:$0xff]  ;;  %v41_v51 = vld [vmem:[%s1023_s2 + $0x8] sm:$0xff]  ;;  %p853_p8 = por %p852_p7, %p851_p6 }
  0x17   :  { %738 = vmatpush3.msra.mxu0 %v42_v4  ;;  %763 = vmatpush3.msra.mxu1 %v62_v33  ;;  %v54_v41 = vld [vmem:[#allocation2 + $0x60] sm:$0xff]  ;;  %v65_v55 = vld [vmem:[#allocation2 + $0xb8] sm:$0xff]  ;;  %v64_v56 = vld [vmem:[#allocation2 + $0xb0] sm:$0xff] }
  0x18   :  { %740 = vmatmul.mubr.msk.f32.vlgmr.msra.gmra.mxu0 %vm68_vm0, %v37_v5  ;;  %742 = vmatprep.subr.mxu0 %v915_v6  ;;  %v50_v45 = vld [vmem:[#allocation2 + $0x40] sm:$0xff]  ;;  %v48_v57 = vld [vmem:[#allocation2 + $0x30] sm:$0xff]  ;;  %v63_v58 = vld [vmem:[#allocation2 + $0xa8] sm:$0xff]  ;;  %p854_p9 = pnand %p853_p8, %p847_p5 }
  0x19   :  { %744 = vmatprep.mubr.msk.f32.mxu0 %vm916_vm1, %v915_v6  ;;  %764 = vmatprep.subr.mxu1 %v61_v34  ;;  %v66_v54 = vld [vmem:[#allocation2 + $0xc0] sm:$0xff]  ;;  %v38_v59 = vld [vmem:[%s1021_s0 + $0x10] sm:$0xff]  ;;  %v47_v60 = vld [vmem:[#allocation2 + $0x28] sm:$0xff] }
  0x1a   :  { %765 = vmatpush3.msra.mxu1 %v61_v34  ;;  %v39_v61 = vld [vmem:[%s1021_s0 + $0x18] sm:$0xff] }
  0x1b   :  { %766 = vmatprep.subr.mxu1 %v60_v35 }
  0x1c   :  { %767 = vmatpush3.msra.mxu1 %v60_v35 }
  0x1d   :  { %768 = vmatprep.subr.mxu1 %v59_v36 }
  0x1e   :  { %769 = vmatpush3.msra.mxu1 %v59_v36 }
  0x1f   :  { %770 = vmatprep.subr.mxu1 %v58_v37 }
  0x20   :  { %771 = vmatpush3.msra.mxu1 %v58_v37 }
  0x21   :  { %772 = vmatprep.subr.mxu1 %v57_v38 }
  0x22   :  { %773 = vmatpush3.msra.mxu1 %v57_v38 }
  0x23   :  { %774 = vmatprep.subr.mxu1 %v56_v39 }
  0x24   :  { %775 = vmatpush3.msra.mxu1 %v56_v39 }
  0x25   :  { %776 = vmatprep.subr.mxu1 %v55_v40 }
  0x26   :  { %777 = vmatpush3.msra.mxu1 %v55_v40 }
  0x27   :  { %778 = vmatprep.subr.mxu1 %v54_v41 }
  0x28   :  { %779 = vmatpush3.msra.mxu1 %v54_v41 }
  0x29   :  { %780 = vmatprep.subr.mxu1 %v53_v42 }
  0x2a   :  { %781 = vmatpush3.msra.mxu1 %v53_v42 }
  0x2b   :  { %782 = vmatprep.subr.mxu1 %v52_v43 }
  0x2c   :  { %783 = vmatpush3.msra.mxu1 %v52_v43 }
  0x2d   :  { %784 = vmatprep.subr.mxu1 %v51_v44 }
  0x2e   :  { %785 = vmatpush3.msra.mxu1 %v51_v44 }
  0x2f   :  { %786 = vmatprep.subr.mxu1 %v50_v45 }
  0x30   :  { %787 = vmatpush3.msra.mxu1 %v50_v45 }
  0x31   :  { %788 = vmatprep.subr.mxu1 %v49_v46 }
  0x32   :  { %789 = vmatpush3.msra.mxu1 %v49_v46 }
  0x33   :  { %790 = vmatprep.subr.mxu1 %v48_v57 }
  0x34   :  { %791 = vmatpush3.msra.mxu1 %v48_v57 }
  0x35   :  { %792 = vmatprep.subr.mxu1 %v47_v60 }
  0x36   :  { %793 = vmatpush3.msra.mxu1 %v47_v60 }
  0xd8   :  { %v741_v7 = vpop.f32.mrf.mxu0 }
  0xda   :  { %v141_v9 = vpop.f32.mrf.mxu0 }
  0xdb   :  { %743 = vmatpush3.msra.mxu0 %v141_v9 }
  0xdc   :  { %745 = vmatmul.mubr.msk.f32.vlgmr.msra.gmra.mxu0 %vm150_vm2, %v40_v8  ;;  %747 = vmatprep.subr.mxu0 %v915_v6 }
  0xdd   :  { %748 = vmatpush3.msra.mxu0 %v741_v7  ;;  %749 = vmatprep.mubr.msk.f32.mxu0 %vm916_vm1, %v915_v6 }
  0xde   :  { %752 = vmatprep.subr.mxu0 %v915_v6 }
  0xe0   :  { %750 = vmatmul.mubr.msk.f32.vlgmr.msra.gmra.mxu0 %vm150_vm2, %v40_v8 }
  0xe1   :  { %754 = vmatprep.mubr.msk.f32.mxu0 %vm916_vm1, %v915_v6 }
 0x19c   :  { %v220_v11 = vpop.f32.mrf.mxu0 }
 0x19d   :  { %v221_v13 = vadd.f32 %v220_v11, %v46_v10 }
 0x19e   :  { %v746_v14 = vpop.f32.mrf.mxu0 }
 0x19f   :  { %294 = vst [vmem:[#allocation6] sm:$0xf] %v221_v13  ;;  %v298_v15 = vadd.f32 %v296_v12, %v221_v13 }
 0x1a0   :  { %v290_v16 = vpop.f32.mrf.mxu0 }
 0x1a1   :  { %v291_v18 = vadd.f32 %v290_v16, %v46_v10  ;;  %v301_v19 = vsel %vm300_vm3, %v298_v15, -inf }
 0x1a2   :  { %302 = vmax.xlane.f32.xlu0 %v301_v19  ;;  %v751_v20 = vpop.f32.mrf.mxu0 }
 0x1a3   :  { %295 = vst [vmem:[#allocation6 + $0x4] sm:$0xf] %v291_v18  ;;  %v299_v21 = vadd.f32 %v297_v17, %v291_v18 }
 0x1a5   :  { %v304_v22 = vsel %vm300_vm3, %v299_v21, -inf }
 0x1a6   :  { %305 = vmax.xlane.f32.xlu0 %v304_v22 }
 0x22b   :  { %v303_v23 = vpop.xlane.xlu0 %302 }
 0x22c   :  { %v307_v24 = vsub.f32 %v298_v15, %v303_v23 }
 0x22e   :  { %v309_v25 = vmul.f32 1.442695, %v307_v24 }
 0x22f   :  { %v306_v26 = vpop.xlane.xlu0 %305 }
 0x230   :  { %818 = vpow2.f32 %v309_v25  ;;  %v308_v27 = vsub.f32 %v299_v21, %v306_v26 }
 0x232   :  { %v311_v28 = vmul.f32 1.442695, %v308_v27 }
 0x234   :  { %820 = vpow2.f32 %v311_v28 }
 0x23d   :  { %v819_v29 = vpop.eup %818 }
 0x23e   :  { %v313_v30 = vsel %vm300_vm3, %v819_v29, 0.0 }
 0x23f   :  { %314 = vadd.xlane.f32.xlu1 %v313_v30 }
 0x241   :  { %v821_v31 = vpop.eup %820 }
 0x242   :  { %v316_v32 = vsel %vm300_vm3, %v821_v31, 0.0 }
 0x243   :  { %317 = vadd.xlane.f32.xlu1 %v316_v32 }
 0x2c8   :  { %v315_v47 = vpop.xlane.xlu1 %314 }
 0x2c9   :  { %822 = vrcp.f32 %v315_v47 }
 0x2cc   :  { %v318_v48 = vpop.xlane.xlu1 %317 }
 0x2cd   :  { %824 = vrcp.f32 %v318_v48 }
 0x2d6   :  { %v823_v49 = vpop.eup %822 }
 0x2d7   :  { %v320_v50 = vmul.f32 %v823_v49, %v819_v29 }
 0x2d9   :  { %753 = vmatpush3.msk.msra.mxu0 %vm300_vm3, %v320_v50  ;;  %323 = vst [vmem:[#allocation8] sm:$0xf] %v320_v50 }
 0x2da   :  { %v825_v52 = vpop.eup %824  ;;  %755 = vmatmul.mubr.msk.f32.vlgmr.msra.gmra.mxu0 %vm325_vm4, %v41_v51  ;;  %757 = vmatprep.subr.mxu0 %v915_v6 }
 0x2db   :  { %v322_v53 = vmul.f32 %v825_v52, %v821_v31  ;;  %759 = vmatprep.mubr.msk.f32.mxu0 %vm916_vm1, %v915_v6 }
 0x2dd   :  { %758 = vmatpush3.msk.msra.mxu0 %vm300_vm3, %v322_v53  ;;  %324 = vst [vmem:[#allocation8 + $0x4] sm:$0xf] %v322_v53 }
 0x2de   :  { %760 = vmatmul.mubr.msk.f32.vlgmr.msra.gmra.mxu0 %vm325_vm4, %v41_v51  ;;  %797 = vmatprep.subr.mxu0 %v66_v54 }
 0x2df   :  { %798 = vmatpush3.msra.mxu0 %v66_v54  ;;  %805 = vmatprep.mubr.msk.f32.mxu0 %vm68_vm0, %v38_v59 }
 0x2e0   :  { %799 = vmatprep.subr.mxu0 %v65_v55 }
 0x2e1   :  { %800 = vmatpush3.msra.mxu0 %v65_v55 }
 0x2e2   :  { %801 = vmatprep.subr.mxu0 %v64_v56 }
 0x2e3   :  { %802 = vmatpush3.msra.mxu0 %v64_v56 }
 0x2e4   :  { %803 = vmatprep.subr.mxu0 %v63_v58 }
 0x2e5   :  { %804 = vmatpush3.msra.mxu0 %v63_v58 }
 0x2e6   :  { %806 = vmatmul.mubr.msk.f32.vlgmr.msra.gmra.mxu0 %vm68_vm0, %v39_v61 }
 0x39a   :  { %v398_v62 = vpop.f32.mrf.mxu0 }
 0x39b   :  { %794 = vmatprep.mubr.f32.mxu1 %v398_v62 }
 0x39c   :  { %v756_v63 = vpop.f32.mrf.mxu0 }
 0x39e   :  { %v471_v0 = vpop.f32.mrf.mxu0 }
 0x39f   :  { %795 = vmatmul.mubr.f32.vlgmr.msra.gmra.mxu1 %v471_v0 }
 0x3a0   :  { %v761_v1 = vpop.f32.mrf.mxu0 }
 0x3a1   :  { %857 = shalt.err (!%p854_p9)
}
 0x3a2   :  { %s918_s0 = smov 64   ;;  %s919_s20 = smov 4  }
 0x3a3   :  { %658 = dma.vmem_to_hbm [thread:$0]  %s653_s18, 128, %s1026_s5, [#allocation7], %s918_s0, %s918_s0, %s919_s20  }
 0x3a4   :  { %s920_s23 = smov [#allocation8]  }
 0x3a5   :  { %s664_s26 = sshll.u32 %s920_s23, 4  ;;  %s665_s26 = int_to_ptr.vmem [resolvable:$true] %s664_s26 }
 0x3a6   :  { %s866_s27 = scalar_lea.vmem %s665_s26, 128  ;;  %p871_p11 = scmp.lt.s32.totalorder %s665_s26, %s665_s26 }
 0x3a7   :  { %p867_p10 = scmp.ne.s32.totalorder %s665_s26, %s866_s27  ;;  %p872_p12 = scmp.lt.s32.totalorder %s866_s27, %s866_s27 }
 0x3a9   :  { %p873_p13 = por %p872_p12, %p871_p11 }
 0x3ab   :  { %p874_p0 = pnand %p873_p13, %p867_p10 }
 0x3ad   :  { %877 = shalt.err (!%p874_p0)
}
 0x3ae   :  { %670 = dma.vmem_to_hbm [thread:$0]  %s665_s26, 128, %s1027_s6, [#allocation7], %s918_s0, %s918_s0, %s919_s20   ;;  %v807_v2 = vpop.f32.mrf.mxu0  ;;  %v67_v4 = vld [vmem:[#allocation2 + $0xc8] sm:$0xff] }
 0x3af   :  { %s921_s5 = smov [#allocation5]  }
 0x3b0   :  { %v622_v7 = vpop.f32.mrf.mxu0  ;;  %s640_s3 = sshll.u32 %s921_s5, 4  ;;  %s641_s3 = int_to_ptr.vmem [resolvable:$true] %s640_s3 }
 0x3b1   :  { %s886_s30 = scalar_lea.vmem %s641_s3, 256  ;;  %p891_p2 = scmp.lt.s32.totalorder %s641_s3, %s641_s3 }
 0x3b2   :  { %p887_p1 = scmp.ne.s32.totalorder %s641_s3, %s886_s30  ;;  %p892_p3 = scmp.lt.s32.totalorder %s886_s30, %s886_s30 }
 0x3b4   :  { %p893_p4 = por %p892_p3, %p891_p2 }
 0x3b6   :  { %p894_p5 = pnand %p893_p4, %p887_p1 }
 0x45f   :  { %v796_v3 = vpop.f32.mrf.mxu1 }
 0x460   :  { %v628_v5 = vadd.f32 %v807_v2, %v796_v3 }
 0x461   :  { %v541_v6 = vpop.f32.mrf.mxu1 }
 0x462   :  { %v632_v8 = vadd.f32 %v628_v5, %v67_v4  ;;  %v623_v9 = vadd.f32 %v622_v7, %v541_v6 }
 0x464   :  { %634 = vst [vmem:[#allocation5 + $0x8] sm:$0xff] %v632_v8  ;;  %v631_v10 = vadd.f32 %v623_v9, %v67_v4 }
 0x466   :  { %633 = vst [vmem:[#allocation5] sm:$0xff] %v631_v10 }
 0x467   :  { %897 = shalt.err (!%p894_p5)
}
 0x468   :  { %646 = dma.vmem_to_hbm [thread:$0]  %s641_s3, 256, %s1025_s4, [#allocation4], %s913_s24, %s913_s24, %s914_s25  }
 0x469   :  { %908 = dma.done.wait [#allocation4], 256  }
 0x46a   :  { %909 = vsyncadd [#allocation4], 4294967040 }
 0x46b   :  { %910 = dma.done.wait [#allocation7], 256  }
 0x46c   :  { %911 = vsyncadd [#allocation7], 4294967040 }
 0x46d   :  { %680 = vsyncpa [#allocation3], 1 }
 0x46e   :  { %681 = vsyncpa [#allocation4], 1 }
 0x46f   :  { %682 = vsyncpa [#allocation7], 1 }

</bundles_post_ra>
